<compile_context>
chip_gen: v6e
topology: v6e:2x2x1
jax: 0.10.0
libtpu: 0.0.40
codegen_flags: <defaults>
</compile_context>

<pallas_src>
import jax
import jax.numpy as jnp
from jax import lax
from jax.experimental import pallas as pl
from jax.experimental.pallas import tpu as pltpu


def mf_forward_kernel(idx_ref, tab_ref, out_ref, *emb_refs):
    """One batch tile.

    idx_ref : (1, 1, 2*TB) int32  lanes [0:TB) = user idx, [TB:2TB) = NU + item idx
    tab_ref : (K, NU+NI)   f32    stacked, transposed embedding tables (resident)
    out_ref : (1, TB)      f32    sigmoid(sum_k U*V) for the tile
    emb_refs: optionally one (2K, TB) f32 ref: rows 0:K = U_emb^T, K:2K = V_emb^T
              (training only).
    """
    k, n_rows = tab_ref.shape
    two_tb = idx_ref.shape[-1]
    tb = two_tb // 2

    idx = idx_ref[0]                                          # (1, 2*TB)

    # Gather-as-matmul: one iota + one compare + one MXU pass (no concat copy).
    #   tab (K, n_rows) @ onehot (n_rows, 2*TB) -> embT (K, 2*TB)
    row_iota = lax.broadcasted_iota(jnp.int32, (n_rows, two_tb), 0)
    onehot = (row_iota == idx).astype(tab_ref.dtype)          # (n_rows, 2*TB)
    embT = jnp.dot(tab_ref[...], onehot,
                   preferred_element_type=jnp.float32)        # (K, 2*TB)

    u_embT = embT[:, :tb]                                     # (K, TB)
    v_embT = embT[:, tb:]                                     # (K, TB)

    # Reduce over the K sublanes (cheap XLU), sigmoid on the EUP, lane-dense store.
    logits = jnp.sum(u_embT * v_embT, axis=0, keepdims=True)  # (1, TB)
    out_ref[...] = jax.nn.sigmoid(logits).astype(out_ref.dtype)

    if emb_refs:                                              # training only
        (emb_ref,) = emb_refs
        # Single (2K, TB) = (8, TB) block: one full-sublane output stream.
        emb = jnp.concatenate([u_embT, v_embT], axis=0)       # tiny sublane stack
        emb_ref[...] = emb.astype(emb_ref.dtype)


def prepare_fused_table(W, H):
    """Hoistable table prep: stacked + transposed (K, NU+NI) f32 table."""
    return jnp.concatenate([W, H], axis=0).T.astype(jnp.float32)


def _pick_tile_b(batch, n_rows):
    """Largest batch tile whose (n_rows, 2*TB) f32 one-hot temp stays <= ~8 MiB.

    Small tables -> tile_b rises to 512 (amortizes per-step overhead on
    v5e/v6e); large tables -> tile_b shrinks so the one-hot path still fits
    v7x's smaller VMEM.
    """
    budget = 8 * 1024 * 1024
    tb = budget // max(1, n_rows * 2 * 4)
    tb = (tb // 128) * 128
    tb = max(128, min(512, tb))
    b_pad_min = pl.cdiv(batch, 128) * 128
    return int(min(tb, max(128, b_pad_min)))


def mf_base_forward(x, W, H, is_training=False, tile_b=None, table_t=None):
    """MF_BaseModel.forward.

    x: (B, 2) int [user_idx, item_idx]; W: (NU, K) f32; H: (NI, K) f32.
    Returns sigmoid(sum_k W[u]*H[i]) of shape (B,); plus (U_emb, V_emb) each
    (B, K) when is_training=True.  Pass table_t=prepare_fused_table(W, H) to
    hoist the per-call table stacking/transpose out of the forward.
    """
    B = x.shape[0]
    nu, k = W.shape
    ni, _ = H.shape
    n_rows = nu + ni

    if table_t is None:
        table_t = prepare_fused_table(W, H)
    if tile_b is None:
        tile_b = _pick_tile_b(B, n_rows)

    num_tiles = pl.cdiv(B, tile_b)
    b_pad = num_tiles * tile_b
    two_tb = 2 * tile_b

    # Per-tile lane-dense index block: [user | nu + item].  Padded batch rows
    # gather row 0 / row nu (real rows) and are sliced off below.  NOTE:
    # out-of-range indices gather nothing -> sigmoid(0)=0.5 (torch would raise).
    user_idx = x[:, 0].astype(jnp.int32)
    item_idx = x[:, 1].astype(jnp.int32)
    u_pad = jnp.zeros((b_pad,), jnp.int32).at[:B].set(user_idx)
    v_pad = jnp.zeros((b_pad,), jnp.int32).at[:B].set(item_idx + nu)
    idx_cat = jnp.concatenate(
        [u_pad.reshape(num_tiles, 1, tile_b),
         v_pad.reshape(num_tiles, 1, tile_b)], axis=-1)       # (T, 1, 2*tile_b)

    # VMEM accounting, kept consistent with vmem_limit_bytes below.  Dominant
    # per-step temporaries are the int32 iota and f32 one-hot, each
    # (n_rows, 2*tile_b); inputs/outputs are double-buffered by the pipeline.
    est_bytes = (
        2 * (two_tb * 4)                                      # idx block  (x2 bufs)
        + 2 * (k * n_rows * 4)                                # table      (x2 bufs)
        + 2 * (n_rows * two_tb * 4)                           # iota + one-hot temps
        + (k * two_tb * 4)                                    # embT
        + 2 * (1 + (2 * k if is_training else 0)) * tile_b * 4  # outputs (x2 bufs)
    )
    vmem_limit = min(max(int(est_bytes * 1.5) + (4 << 20), 16 << 20), 48 << 20)
    assert int(est_bytes * 1.25) <= vmem_limit, (
        "Embedding tables too large for the resident-table one-hot gather at "
        f"tile_b={tile_b} (est {est_bytes / 2**20:.1f} MiB); shrink tile_b or "
        "switch to an HBM (pl.ANY) + DMA row-gather path.")

    in_specs = [
        pl.BlockSpec((1, 1, two_tb), lambda t: (t, 0, 0)),    # fused index block
        pl.BlockSpec((k, n_rows), lambda t: (0, 0)),          # resident table
    ]
    out_shape = [jax.ShapeDtypeStruct((1, b_pad), jnp.float32)]
    out_specs = [pl.BlockSpec((1, tile_b), lambda t: (0, t))]
    if is_training:
        out_shape.append(jax.ShapeDtypeStruct((2 * k, b_pad), jnp.float32))
        out_specs.append(pl.BlockSpec((2 * k, tile_b), lambda t: (0, t)))

    cost = pl.CostEstimate(
        flops=2 * k * n_rows * two_tb * num_tiles,
        transcendentals=b_pad,
        bytes_accessed=(k * n_rows * 4 + b_pad * 2 * 4
                        + b_pad * 4 * (1 + (2 * k if is_training else 0))),
    )

    results = pl.pallas_call(
        mf_forward_kernel,
        out_shape=tuple(out_shape),
        grid_spec=pltpu.PrefetchScalarGridSpec(
            num_scalar_prefetch=0,
            grid=(num_tiles,),
            in_specs=in_specs,
            out_specs=tuple(out_specs),
        ),
        compiler_params=pltpu.CompilerParams(
            dimension_semantics=("parallel",),   # batch tiles shard over TCs
            vmem_limit_bytes=vmem_limit,
        ),
        cost_estimate=cost,
    )(idx_cat, table_t)

    probs = results[0].reshape(-1)[:B]
    if is_training:
        uv = results[1]                                       # (2K, B_pad)
        u_emb = uv[:k, :].T[:B]                               # (B, K)
        v_emb = uv[k:, :].T[:B]                               # (B, K)
        return probs, u_emb, v_emb
    return probs


if __name__ == "__main__":
    # Module hyperparameters (small, consistent with the forward pass)
    num_users, num_items, embedding_k = 32, 48, 4
    batch = 8

    key = jax.random.PRNGKey(0)
    k_w, k_h, k_u, k_i = jax.random.split(key, 4)

    # torch.nn.Embedding default init ~ N(0, 1)
    W = jax.random.normal(k_w, (num_users, embedding_k), dtype=jnp.float32)
    H = jax.random.normal(k_h, (num_items, embedding_k), dtype=jnp.float32)

    # x: (B, 2) = [user_idx, item_idx]
    u_idx = jax.random.randint(k_u, (batch,), 0, num_users, dtype=jnp.int32)
    i_idx = jax.random.randint(k_i, (batch,), 0, num_items, dtype=jnp.int32)
    x = jnp.stack([u_idx, i_idx], axis=1)

    # Hoisted table prep (done once, reused by both calls)
    table_t = prepare_fused_table(W, H)

    # Training path: (out, U_emb, V_emb)
    out_tr, u_emb, v_emb = mf_base_forward(x, W, H, is_training=True,
                                           table_t=table_t)
    out_tr = jax.block_until_ready(out_tr)

    # Inference path: probabilities only (no embedding writeback)
    out_inf = jax.block_until_ready(
        mf_base_forward(x, W, H, is_training=False, table_t=table_t))

    # Pure-JAX reference of the PyTorch forward semantics
    ref_u = W[u_idx]
    ref_v = H[i_idx]
    ref_out = jax.nn.sigmoid(jnp.sum(ref_u * ref_v, axis=1))

    assert out_inf.shape == (batch,)
    assert jnp.allclose(out_inf, ref_out, atol=1e-5, rtol=1e-5)
    assert jnp.allclose(out_tr, ref_out, atol=1e-5, rtol=1e-5)
    assert jnp.allclose(u_emb, ref_u, atol=1e-5, rtol=1e-5)
    assert jnp.allclose(v_emb, ref_v, atol=1e-5, rtol=1e-5)

    print("KERNEL_OK")
</pallas_src>

<mosaic_0001>
module attributes {stable_mosaic.version = 11 : i64} {
  func.func @mf_forward_kernel(%arg0: i32, %arg1: memref<1x1x256xi32, #tpu.memory_space<vmem>>, %arg2: memref<4x80xf32, #tpu.memory_space<vmem>>, %arg3: memref<1x128xf32, #tpu.memory_space<vmem>>, %arg4: memref<8x128xf32, #tpu.memory_space<vmem>>) attributes {dimension_semantics = [#tpu.dimension_semantics<parallel>], iteration_bounds = array<i64: 1>, scalar_prefetch = 0 : i64, scratch_operands = 0 : i64, tpu.core_type = #tpu.core_type<tc>, window_params = [{transform_indices = @transform_0, window_bounds = array<i64: 1, 1, 256>}, {pipeline_mode = #tpu.pipeline_mode<synchronous>, transform_indices = @transform_1, window_bounds = array<i64: 4, 80>}, {transform_indices = @transform_2, window_bounds = array<i64: 1, 128>}, {transform_indices = @transform_3, window_bounds = array<i64: 8, 128>}]} {
    %c0 = arith.constant 0 : index
    %c0_0 = arith.constant 0 : index
    %c0_1 = arith.constant 0 : index
    %0 = vector.load %arg1[%c0, %c0_0, %c0_1] : memref<1x1x256xi32, #tpu.memory_space<vmem>>, vector<1x1x256xi32>
    %1 = vector.shape_cast %0 : vector<1x1x256xi32> to vector<1x256xi32>
    %2 = tpu.iota {dimensions = array<i32: 0>} : vector<80x256xi32>
    %3 = vector.broadcast %1 : vector<1x256xi32> to vector<80x256xi32>
    %4 = arith.cmpi eq, %2, %3 : vector<80x256xi32>
    %5 = arith.extui %4 : vector<80x256xi1> to vector<80x256xi32>
    %6 = arith.sitofp %5 : vector<80x256xi32> to vector<80x256xf32>
    %c0_2 = arith.constant 0 : index
    %c0_3 = arith.constant 0 : index
    %7 = vector.load %arg2[%c0_2, %c0_3] : memref<4x80xf32, #tpu.memory_space<vmem>>, vector<4x80xf32>
    %cst = arith.constant dense<0.000000e+00> : vector<4x256xf32>
    %8 = tpu.matmul %7, %6, %cst {dimension_numbers = #tpu.dot_dimension_numbers<[1], [0], [0], [1], [0, 0, 1, 1], [], []>} : vector<4x80xf32>, vector<80x256xf32>, vector<4x256xf32> -> vector<4x256xf32>
    %9 = vector.extract_strided_slice %8 {offsets = [0, 0], sizes = [4, 128], strides = [1, 1]} : vector<4x256xf32> to vector<4x128xf32>
    %10 = vector.extract_strided_slice %8 {offsets = [0, 128], sizes = [4, 128], strides = [1, 1]} : vector<4x256xf32> to vector<4x128xf32>
    %11 = arith.mulf %9, %10 : vector<4x128xf32>
    %cst_4 = arith.constant dense<0.000000e+00> : vector<128xf32>
    %12 = vector.multi_reduction <add>, %11, %cst_4 [0] : vector<4x128xf32> to vector<128xf32>
    %13 = vector.shape_cast %12 : vector<128xf32> to vector<1x128xf32>
    %14 = arith.negf %13 : vector<1x128xf32>
    %15 = math.exp %14 : vector<1x128xf32>
    %cst_5 = arith.constant 1.000000e+00 : f32
    %16 = vector.broadcast %cst_5 : f32 to vector<1x128xf32>
    %17 = arith.addf %16, %15 : vector<1x128xf32>
    %18 = arith.divf %16, %17 : vector<1x128xf32>
    %c0_6 = arith.constant 0 : index
    %c0_7 = arith.constant 0 : index
    %19 = vector.load %arg3[%c0_6, %c0_7] : memref<1x128xf32, #tpu.memory_space<vmem>>, vector<1x128xf32>
    tpu.vector_store %arg3[%c0_6, %c0_7], %18 {strides = array<i32>} : memref<1x128xf32, #tpu.memory_space<vmem>>, vector<1x128xf32>,
    %20 = tpu.concatenate %9, %10 in 0 : vector<4x128xf32>, vector<4x128xf32> -> vector<8x128xf32>
    %c0_8 = arith.constant 0 : index
    %c0_9 = arith.constant 0 : index
    %21 = vector.load %arg4[%c0_8, %c0_9] : memref<8x128xf32, #tpu.memory_space<vmem>>, vector<8x128xf32>
    tpu.vector_store %arg4[%c0_8, %c0_9], %20 {strides = array<i32>} : memref<8x128xf32, #tpu.memory_space<vmem>>, vector<8x128xf32>,
    return
  }
  func.func @transform_0(%arg0: i32) -> (i32, i32, i32) {
    %c0_i32 = arith.constant 0 : i32
    %c0_i32_0 = arith.constant 0 : i32
    %c0_i32_1 = arith.constant 0 : i32
    return %arg0, %c0_i32, %c0_i32_0 : i32, i32, i32
  }
  func.func @transform_1(%arg0: i32) -> (i32, i32) {
    %c0_i32 = arith.constant 0 : i32
    %c0_i32_0 = arith.constant 0 : i32
    %c0_i32_1 = arith.constant 0 : i32
    return %c0_i32, %c0_i32_0 : i32, i32
  }
  func.func @transform_2(%arg0: i32) -> (i32, i32) {
    %c0_i32 = arith.constant 0 : i32
    %c0_i32_0 = arith.constant 0 : i32
    return %c0_i32, %arg0 : i32, i32
  }
  func.func @transform_3(%arg0: i32) -> (i32, i32) {
    %c0_i32 = arith.constant 0 : i32
    %c0_i32_0 = arith.constant 0 : i32
    return %c0_i32, %arg0 : i32, i32
  }
}

</mosaic_0001>

<bundles_post_ra>
// kernel: tpu_custom_call.1
= control target key start
LH: loop header
LB: loop body
LE: loop exit
PB: predicated region body
PF: predicated region fallthrough
CT: control target
= control target key end

     0   :  { %9 = vsyncpa [#allocation3], 0  ;;  %s424_s0 = inlined_call_operand.hbm [shape: s32[1,1,256], index: 0, kind: input, shape index: {}]   ;;  %s425_s1 = inlined_call_operand.hbm [shape: f32[4,80], index: 1, kind: input, shape index: {}]   ;;  %s426_s2 = inlined_call_operand.hbm [shape: f32[1,128], index: 2, kind: output, shape index: {0}]   ;;  %s427_s3 = inlined_call_operand.hbm [shape: f32[8,128], index: 3, kind: output, shape index: {1}]  }
   0x1   :  { %10 = vsyncpa [#allocation6], 0 }
   0x2   :  { %11 = vsyncpa [#allocation4], 0 }
   0x3   :  { %12 = vsyncpa [#allocation9], 0  ;;  %s386_s12 = smov [#allocation2]   ;;  %s387_s14 = smov [#allocation5]  }
   0x4   :  { %s19_s13 = sshll.u32 %s386_s12, 4  ;;  %s29_s15 = sshll.u32 %s387_s14, 4  ;;  %s20_s13 = int_to_ptr.vmem [resolvable:$true] %s19_s13  ;;  %s30_s15 = int_to_ptr.vmem [resolvable:$true] %s29_s15 }
   0x5   :  { %s306_s16 = scalar_lea.vmem %s20_s13, 32  ;;  %p311_p1 = scmp.lt.s32.totalorder %s20_s13, %s20_s13 }
   0x6   :  { %p307_p0 = scmp.ne.s32.totalorder %s20_s13, %s306_s16  ;;  %p312_p2 = scmp.lt.s32.totalorder %s306_s16, %s306_s16 }
   0x8   :  { %p313_p3 = por %p312_p2, %p311_p1 }
   0xa   :  { %p314_p4 = pnand %p313_p3, %p307_p0 }
   0xc   :  { %317 = shalt.err (!%p314_p4)
}
   0xd   :  { %22 = dma.hbm_to_vmem [thread:$0]  %s424_s0, 32, %s20_s13, [#allocation3]  }
   0xe   :  { %s326_s19 = scalar_lea.vmem %s30_s15, 64  ;;  %p331_p6 = scmp.lt.s32.totalorder %s30_s15, %s30_s15 }
   0xf   :  { %p327_p5 = scmp.ne.s32.totalorder %s30_s15, %s326_s19  ;;  %p332_p7 = scmp.lt.s32.totalorder %s326_s19, %s326_s19 }
  0x11   :  { %p333_p8 = por %p332_p7, %p331_p6 }
  0x13   :  { %p334_p9 = pnand %p333_p8, %p327_p5 }
  0x15   :  { %337 = shalt.err (!%p334_p9)
}
  0x16   :  { %32 = dma.hbm_to_vmem [thread:$0]  %s425_s1, 64, %s30_s15, [#allocation6]  }
  0x17   :  { %378 = dma.done.wait [#allocation3], 32  }
  0x18   :  { %379 = vsyncadd [#allocation3], 4294967264 }
  0x19   :  { %380 = dma.done.wait [#allocation6], 64  }
  0x1a   :  { %381 = vsyncadd [#allocation6], 4294967232  ;;  %v40_v0 = vlaneseq  ;;  %v388_v1 = vmov 0.0   ;;  %v39_v7 = vld [vmem:[#allocation2] sm:$0x3]  ;;  %v389_v12 = vmov 1.0  }
  0x1b   :  { %188 = vmatprep.mubr.f32.mxu0 %v388_v1  ;;  %v119_v18 = vld [vmem:[#allocation5] sm:$0xf]  ;;  %s390_s0 = smov [#allocation8]  }
  0x1c   :  { %v41_v2 = vshrl.u32 %v40_v0, 7  ;;  %s232_s1 = sshll.u32 %s390_s0, 4  ;;  %s233_s1 = int_to_ptr.vmem [resolvable:$true] %s232_s1 }
  0x1d   :  { %s338_s22 = scalar_lea.vmem %s233_s1, 128  ;;  %p343_p11 = scmp.lt.s32.totalorder %s233_s1, %s233_s1 }
  0x1e   :  { %v57_v3 = vsub.s32 1, %v41_v2  ;;  %v53_v4 = vsub.s32 0, %v41_v2  ;;  %v50_v5 = vadd.s32 72, %v41_v2  ;;  %v49_v6 = vadd.s32 64, %v41_v2  ;;  %p339_p10 = scmp.ne.s32.totalorder %s233_s1, %s338_s22  ;;  %p344_p12 = scmp.lt.s32.totalorder %s338_s22, %s338_s22 }
  0x1f   :  { %v48_v10 = vadd.s32 56, %v41_v2  ;;  %v47_v11 = vadd.s32 48, %v41_v2  ;;  %v46_v13 = vadd.s32 40, %v41_v2  ;;  %v45_v14 = vadd.s32 32, %v41_v2 }
  0x20   :  { %v58_v8 = vrot.slane %v39_v7, %v57_v3  ;;  %v54_v9 = vrot.slane %v39_v7, %v53_v4  ;;  %v44_v15 = vadd.s32 24, %v41_v2  ;;  %v43_v16 = vadd.s32 16, %v41_v2  ;;  %p345_p13 = por %p344_p12, %p343_p11 }
  0x21   :  { %v42_v17 = vadd.s32 8, %v41_v2 }
  0x22   :  { %vm78_vm0 = vcmp.eq.s32.totalorder %v50_v5, %v58_v8  ;;  %vm77_vm1 = vcmp.eq.s32.totalorder %v50_v5, %v54_v9  ;;  %vm76_vm2 = vcmp.eq.s32.totalorder %v49_v6, %v58_v8  ;;  %vm75_vm3 = vcmp.eq.s32.totalorder %v49_v6, %v54_v9  ;;  %p346_p0 = pnand %p345_p13, %p339_p10 }
  0x23   :  { %266 = vmatprep.subr.msk.mxu0 %vm78_vm0, %v389_v12  ;;  %vm74_vm4 = vcmp.eq.s32.totalorder %v48_v10, %v58_v8  ;;  %vm73_vm5 = vcmp.eq.s32.totalorder %v48_v10, %v54_v9  ;;  %vm72_vm6 = vcmp.eq.s32.totalorder %v47_v11, %v58_v8  ;;  %vm71_vm7 = vcmp.eq.s32.totalorder %v47_v11, %v54_v9 }
  0x24   :  { %267 = vmatpush1.msk.msra.mxu0 %vm77_vm1, %v389_v12  ;;  %vm70_vm8 = vcmp.eq.s32.totalorder %v46_v13, %v58_v8  ;;  %vm69_vm9 = vcmp.eq.s32.totalorder %v46_v13, %v54_v9  ;;  %vm68_vm10 = vcmp.eq.s32.totalorder %v45_v14, %v58_v8  ;;  %vm67_vm11 = vcmp.eq.s32.totalorder %v45_v14, %v54_v9 }
  0x25   :  { %268 = vmatprep.subr.msk.mxu0 %vm76_vm2, %v389_v12  ;;  %vm66_vm12 = vcmp.eq.s32.totalorder %v44_v15, %v58_v8  ;;  %vm65_vm13 = vcmp.eq.s32.totalorder %v44_v15, %v54_v9  ;;  %vm64_vm14 = vcmp.eq.s32.totalorder %v43_v16, %v58_v8  ;;  %vm63_vm15 = vcmp.eq.s32.totalorder %v43_v16, %v54_v9 }
  0x26   :  { %269 = vmatpush1.msk.msra.mxu0 %vm75_vm3, %v389_v12  ;;  %vm62_vm0 = vcmp.eq.s32.totalorder %v42_v17, %v58_v8  ;;  %vm61_vm1 = vcmp.eq.s32.totalorder %v42_v17, %v54_v9  ;;  %vm60_vm2 = vcmp.eq.s32.totalorder %v41_v2, %v58_v8  ;;  %vm59_vm3 = vcmp.eq.s32.totalorder %v41_v2, %v54_v9 }
  0x27   :  { %270 = vmatprep.subr.msk.mxu0 %vm74_vm4, %v389_v12  ;;  %vm120_vm4 = vcmask 654336  }
  0x28   :  { %271 = vmatpush1.msk.msra.mxu0 %vm73_vm5, %v389_v12  ;;  %vm196_vm5 = vcmask 1043456  }
  0x29   :  { %272 = vmatprep.subr.msk.mxu0 %vm72_vm6, %v389_v12 }
  0x2a   :  { %273 = vmatpush1.msk.msra.mxu0 %vm71_vm7, %v389_v12 }
  0x2b   :  { %274 = vmatprep.subr.msk.mxu0 %vm70_vm8, %v389_v12 }
  0x2c   :  { %275 = vmatpush1.msk.msra.mxu0 %vm69_vm9, %v389_v12 }
  0x2d   :  { %276 = vmatprep.subr.msk.mxu0 %vm68_vm10, %v389_v12 }
  0x2e   :  { %277 = vmatpush1.msk.msra.mxu0 %vm67_vm11, %v389_v12 }
  0x2f   :  { %278 = vmatprep.subr.msk.mxu0 %vm66_vm12, %v389_v12 }
  0x30   :  { %279 = vmatpush1.msk.msra.mxu0 %vm65_vm13, %v389_v12 }
  0x31   :  { %280 = vmatprep.subr.msk.mxu0 %vm64_vm14, %v389_v12 }
  0x32   :  { %281 = vmatpush1.msk.msra.mxu0 %vm63_vm15, %v389_v12 }
  0x33   :  { %282 = vmatprep.subr.msk.mxu0 %vm62_vm0, %v389_v12 }
  0x34   :  { %283 = vmatpush1.msk.msra.mxu0 %vm61_vm1, %v389_v12 }
  0x35   :  { %284 = vmatprep.subr.msk.mxu0 %vm60_vm2, %v389_v12 }
  0x36   :  { %285 = vmatpush1.msk.msra.mxu0 %vm59_vm3, %v389_v12 }
  0x37   :  { %286 = vmatmul.mubr.msk.f32.vlgmr.msra.gmra.mxu0 %vm120_vm4, %v119_v18 }
  0xf7   :  { %v190_v19 = vpop.f32.mrf.mxu0 }
  0xf9   :  { %v192_v20 = vpop.f32.mrf.mxu0 }
  0xfa   :  { %v195_v21 = vmul.f32 %v192_v20, %v190_v19  ;;  %v212_v22 = vrot.slane %v192_v20, 4 }
  0xfc   :  { %v197_v23 = vsel %vm196_vm5, %v195_v21, 0.0  ;;  %v214_v24 = vsel %vm196_vm5, %v190_v19, %v212_v22 }
  0xfd   :  { %v198_v25 = vrot.slane %v197_v23, 4  ;;  %215 = vst [vmem:[#allocation8] sm:$0xff] %v214_v24 }
  0xfe   :  { %349 = shalt.err (!%p346_p0)
}
  0xff   :  { %235 = dma.vmem_to_hbm [thread:$0]  %s233_s1, 128, %s427_s3, [#allocation9]   ;;  %v199_v26 = vadd.f32 %v198_v25, %v197_v23 }
 0x100   :  { %s391_s25 = smov [#allocation7]  }
 0x101   :  { %v200_v27 = vrot.slane %v199_v26, 2  ;;  %s222_s26 = sshll.u32 %s391_s25, 4  ;;  %s223_s26 = int_to_ptr.vmem [resolvable:$true] %s222_s26 }
 0x102   :  { %s358_s27 = scalar_lea.vmem %s223_s26, 16  ;;  %s362_s28 = scalar_lea.vmem %s223_s26, 32 }
 0x103   :  { %v201_v28 = vadd.f32 %v200_v27, %v199_v26  ;;  %p359_p1 = scmp.ne.s32.totalorder %s223_s26, %s358_s27  ;;  %p363_p2 = scmp.lt.s32.totalorder %s223_s26, %s223_s26 }
 0x104   :  { %p364_p3 = scmp.lt.s32.totalorder %s362_s28, %s358_s27 }
 0x105   :  { %v202_v29 = vrot.slane %v201_v28, 1 }
 0x106   :  { %p365_p4 = por %p364_p3, %p363_p2 }
 0x107   :  { %v203_v30 = vadd.f32 %v202_v29, %v201_v28 }
 0x108   :  { %p366_p5 = pnand %p365_p4, %p359_p1 }
 0x109   :  { %v287_v31 = vmul.f32 -1.442695, %v203_v30 }
 0x10b   :  { %294 = vpow2.f32 %v287_v31 }
 0x118   :  { %v295_v32 = vpop.eup %294 }
 0x119   :  { %v207_v33 = vadd.f32 1.0, %v295_v32 }
 0x11b   :  { %296 = vrcp.f32 %v207_v33 }
 0x128   :  { %v297_v34 = vpop.eup %296 }
 0x129   :  { %210 = vst [vmem:[#allocation7] sm:$0x1] %v297_v34 }
 0x12a   :  { %369 = shalt.err (!%p366_p5)
}
 0x12b   :  { %225 = dma.vmem_to_hbm [thread:$0]  %s223_s26, 16, %s426_s2, [#allocation4]  }
 0x12c   :  { %382 = dma.done.wait [#allocation4], 16  }
 0x12d   :  { %383 = vsyncadd [#allocation4], 4294967280 }
 0x12e   :  { %384 = dma.done.wait [#allocation9], 128  }
 0x12f   :  { %385 = vsyncadd [#allocation9], 4294967168 }
 0x130   :  { %242 = vsyncpa [#allocation3], 1 }
 0x131   :  { %243 = vsyncpa [#allocation6], 1 }
 0x132   :  { %244 = vsyncpa [#allocation4], 1 }
 0x133   :  { %245 = vsyncpa [#allocation9], 1 }

</bundles_post_ra>
